<compile_context>
chip_gen: v7x
topology: tpu7x:2x2x1
jax: 0.10.0
libtpu: 0.0.40
codegen_flags: <defaults>
</compile_context>

<pallas_src>
import functools

import jax
import jax.numpy as jnp
from jax.experimental import pallas as pl
from jax.experimental.pallas import tpu as pltpu


def _round_up(n, m):
    return ((n + m - 1) // m) * m


def _pad2(a, rows, cols):
    pr = rows - a.shape[0]
    pc = cols - a.shape[1]
    if pr or pc:
        a = jnp.pad(a, ((0, pr), (0, pc)))
    return a


def _fc_vae_kernel(x_ref, eps_ref,
                   w1_ref, b1_ref,
                   w2_ref, b2_ref,
                   w3_ref, b3_ref,
                   w4_ref, b4_ref,
                   w5_ref, b5_ref,
                   res_ref, mu_ref, log_sigma_ref):
    cdt = w1_ref.dtype  # compute dtype for MXU inputs (bf16)

    x = x_ref[...].astype(cdt)

    # ---- encode ----
    h = jnp.dot(x, w1_ref[...], preferred_element_type=jnp.float32) + b1_ref[...]
    h = jnp.maximum(h, 0.0).astype(cdt)                               # ReLU

    mu = jnp.dot(h, w2_ref[...], preferred_element_type=jnp.float32) + b2_ref[...]
    log_sigma = jnp.dot(h, w3_ref[...], preferred_element_type=jnp.float32) + b3_ref[...]

    # ---- reparameterize (f32) ----
    std = jnp.exp(log_sigma * 0.5)
    z = (mu + std * eps_ref[...]).astype(cdt)

    # ---- decode ----
    h2 = jnp.dot(z, w4_ref[...], preferred_element_type=jnp.float32) + b4_ref[...]
    h2 = jnp.maximum(h2, 0.0).astype(cdt)                             # ReLU
    logits = jnp.dot(h2, w5_ref[...], preferred_element_type=jnp.float32) + b5_ref[...]

    res_ref[...] = jax.nn.sigmoid(logits).astype(res_ref.dtype)
    mu_ref[...] = mu.astype(mu_ref.dtype)
    log_sigma_ref[...] = log_sigma.astype(log_sigma_ref.dtype)


@functools.partial(jax.jit, static_argnames=("tile_m",))
def fc_vae_forward(x, eps, params, *, tile_m=512):
    """FcVAE forward pass as one batch-tiled Pallas call.

    x:   (B, input_dim) float32
    eps: (B, z_dim)     float32 standard-normal noise (torch.randn_like)
    params: dict with w1..w5 stored as (in, out) == torch weight.T and b1..b5 (1, out)
    Returns (res, mu, log_sigma) matching the PyTorch module.
    """
    B, input_dim = x.shape
    h_dim = params["w1"].shape[1]
    z_dim = params["w2"].shape[1]

    # Lane padding (multiples of 128) + batch tile.
    in_p = _round_up(input_dim, 128)
    h_p = _round_up(h_dim, 128)
    z_p = _round_up(z_dim, 128)
    tm = min(tile_m, _round_up(B, 8))
    b_p = _round_up(B, tm)
    grid = (pl.cdiv(b_p, tm),)

    # Zero-padded, dtype-converted operands.
    x_p = _pad2(x.astype(jnp.float32), b_p, in_p)
    eps_p = _pad2(eps.astype(jnp.float32), b_p, z_p)

    cdt = jnp.bfloat16  # MXU input dtype; accumulation stays f32
    w1 = _pad2(params["w1"], in_p, h_p).astype(cdt)
    w2 = _pad2(params["w2"], h_p, z_p).astype(cdt)
    w3 = _pad2(params["w3"], h_p, z_p).astype(cdt)
    w4 = _pad2(params["w4"], z_p, h_p).astype(cdt)
    w5 = _pad2(params["w5"], h_p, in_p).astype(cdt)
    b1 = _pad2(params["b1"], 1, h_p).astype(jnp.float32)
    b2 = _pad2(params["b2"], 1, z_p).astype(jnp.float32)
    b3 = _pad2(params["b3"], 1, z_p).astype(jnp.float32)
    b4 = _pad2(params["b4"], 1, h_p).astype(jnp.float32)
    b5 = _pad2(params["b5"], 1, in_p).astype(jnp.float32)

    # Batch-streamed activation specs vs. VMEM-resident parameter specs.
    def act_spec(feat):
        return pl.BlockSpec((tm, feat), lambda i: (i, 0))

    def resident_spec(arr):
        return pl.BlockSpec(arr.shape, lambda i: (0, 0))

    ins = (x_p, eps_p, w1, b1, w2, b2, w3, b3, w4, b4, w5, b5)
    in_specs = [
        act_spec(in_p), act_spec(z_p),
        resident_spec(w1), resident_spec(b1),
        resident_spec(w2), resident_spec(b2),
        resident_spec(w3), resident_spec(b3),
        resident_spec(w4), resident_spec(b4),
        resident_spec(w5), resident_spec(b5),
    ]
    out_specs = (act_spec(in_p), act_spec(z_p), act_spec(z_p))
    out_shape = (
        jax.ShapeDtypeStruct((b_p, in_p), jnp.float32),  # res
        jax.ShapeDtypeStruct((b_p, z_p), jnp.float32),   # mu
        jax.ShapeDtypeStruct((b_p, z_p), jnp.float32),   # log_sigma
    )

    # Advisory cost estimate (padded problem).
    flops = 2 * b_p * (in_p * h_p + 2 * h_p * z_p + z_p * h_p + h_p * in_p)
    transcendentals = b_p * (in_p + z_p)  # sigmoid + exp
    bytes_accessed = (
        x_p.size * 4 + eps_p.size * 4                      # streamed inputs
        + b_p * in_p * 4 + 2 * b_p * z_p * 4               # streamed outputs
        + sum(int(w.size) * 2 for w in (w1, w2, w3, w4, w5))
        + sum(int(b.size) * 4 for b in (b1, b2, b3, b4, b5))
    )

    res_p, mu_p, ls_p = pl.pallas_call(
        _fc_vae_kernel,
        grid=grid,
        in_specs=in_specs,
        out_specs=out_specs,
        out_shape=out_shape,
        compiler_params=pltpu.CompilerParams(
            dimension_semantics=("parallel",),
            vmem_limit_bytes=48 * 1024 * 1024,  # headroom under v7x's 64 MiB VMEM
        ),
        cost_estimate=pl.CostEstimate(
            flops=flops,
            transcendentals=transcendentals,
            bytes_accessed=bytes_accessed,
        ),
    )(*ins)

    return (res_p[:B, :input_dim], mu_p[:B, :z_dim], ls_p[:B, :z_dim])


def init_params(key, input_dim, h_dim, z_dim):
    """Deterministic synthetic parameters (PyTorch Linear shapes, stored transposed)."""
    keys = jax.random.split(key, 10)

    def linear(kw, kb, fan_in, fan_out):
        bound = 1.0 / jnp.sqrt(fan_in)
        w = jax.random.uniform(kw, (fan_in, fan_out), jnp.float32, -bound, bound)
        b = jax.random.uniform(kb, (1, fan_out), jnp.float32, -bound, bound)
        return w, b

    w1, b1 = linear(keys[0], keys[1], input_dim, h_dim)
    w2, b2 = linear(keys[2], keys[3], h_dim, z_dim)
    w3, b3 = linear(keys[4], keys[5], h_dim, z_dim)
    w4, b4 = linear(keys[6], keys[7], z_dim, h_dim)
    w5, b5 = linear(keys[8], keys[9], h_dim, input_dim)
    return dict(w1=w1, b1=b1, w2=w2, b2=b2, w3=w3, b3=b3,
                w4=w4, b4=b4, w5=w5, b5=b5)


def fc_vae_reference(x, eps, p, compute_dtype=jnp.float32):
    """Pure-JAX reference mirroring the PyTorch forward.

    compute_dtype=bfloat16 mirrors the kernel's bf16-matmul / f32-accumulate recipe.
    """
    def mm(a, w):
        return jnp.dot(a.astype(compute_dtype), w.astype(compute_dtype),
                       preferred_element_type=jnp.float32)

    h = jax.nn.relu(mm(x, p["w1"]) + p["b1"])
    mu = mm(h, p["w2"]) + p["b2"]
    log_sigma = mm(h, p["w3"]) + p["b3"]
    z = mu + jnp.exp(0.5 * log_sigma) * eps
    h2 = jax.nn.relu(mm(z, p["w4"]) + p["b4"])
    res = jax.nn.sigmoid(mm(h2, p["w5"]) + p["b5"])
    return res, mu, log_sigma


if __name__ == "__main__":
    # Small shapes consistent with the module (input_dim=784, h_dim=400, z_dim=20 scaled down).
    B, INPUT_DIM, H_DIM, Z_DIM = 8, 64, 32, 16

    key = jax.random.PRNGKey(0)
    k_params, k_x, k_eps = jax.random.split(key, 3)

    params = init_params(k_params, INPUT_DIM, H_DIM, Z_DIM)
    x = jax.random.normal(k_x, (B, INPUT_DIM), jnp.float32)
    eps = jax.random.normal(k_eps, (B, Z_DIM), jnp.float32)  # torch.randn_like(std)

    res, mu, log_sigma = fc_vae_forward(x, eps, params)
    jax.block_until_ready((res, mu, log_sigma))

    # Strict check vs. a reference using the same bf16-matmul / f32-accumulate recipe.
    r_bf, mu_bf, ls_bf = fc_vae_reference(x, eps, params, compute_dtype=jnp.bfloat16)
    assert jnp.allclose(res, r_bf, atol=1e-3, rtol=1e-3)
    assert jnp.allclose(mu, mu_bf, atol=1e-3, rtol=1e-3)
    assert jnp.allclose(log_sigma, ls_bf, atol=1e-3, rtol=1e-3)

    # Loose check vs. the full-f32 reference (bf16 rounding of matmul inputs only).
    r_f32, mu_f32, ls_f32 = fc_vae_reference(x, eps, params, compute_dtype=jnp.float32)
    assert jnp.allclose(res, r_f32, atol=5e-2, rtol=5e-2)
    assert jnp.allclose(mu, mu_f32, atol=5e-2, rtol=5e-2)
    assert jnp.allclose(log_sigma, ls_f32, atol=5e-2, rtol=5e-2)

    print("KERNEL_OK")
</pallas_src>

<mosaic_0001>
module attributes {stable_mosaic.version = 11 : i64} {
  func.func @_fc_vae_kernel(%arg0: i32, %arg1: memref<8x128xf32, #tpu.memory_space<vmem>>, %arg2: memref<8x128xf32, #tpu.memory_space<vmem>>, %arg3: memref<128x128xbf16, #tpu.memory_space<vmem>>, %arg4: memref<1x128xf32, #tpu.memory_space<vmem>>, %arg5: memref<128x128xbf16, #tpu.memory_space<vmem>>, %arg6: memref<1x128xf32, #tpu.memory_space<vmem>>, %arg7: memref<128x128xbf16, #tpu.memory_space<vmem>>, %arg8: memref<1x128xf32, #tpu.memory_space<vmem>>, %arg9: memref<128x128xbf16, #tpu.memory_space<vmem>>, %arg10: memref<1x128xf32, #tpu.memory_space<vmem>>, %arg11: memref<128x128xbf16, #tpu.memory_space<vmem>>, %arg12: memref<1x128xf32, #tpu.memory_space<vmem>>, %arg13: memref<8x128xf32, #tpu.memory_space<vmem>>, %arg14: memref<8x128xf32, #tpu.memory_space<vmem>>, %arg15: memref<8x128xf32, #tpu.memory_space<vmem>>) attributes {dimension_semantics = [#tpu.dimension_semantics<parallel>], iteration_bounds = array<i64: 1>, scalar_prefetch = 0 : i64, scratch_operands = 0 : i64, tpu.core_type = #tpu.core_type<tc>, window_params = [{transform_indices = @transform_0, window_bounds = array<i64: 8, 128>}, {transform_indices = @transform_1, window_bounds = array<i64: 8, 128>}, {pipeline_mode = #tpu.pipeline_mode<synchronous>, transform_indices = @transform_2, window_bounds = array<i64: 128, 128>}, {pipeline_mode = #tpu.pipeline_mode<synchronous>, transform_indices = @transform_3, window_bounds = array<i64: 1, 128>}, {pipeline_mode = #tpu.pipeline_mode<synchronous>, transform_indices = @transform_4, window_bounds = array<i64: 128, 128>}, {pipeline_mode = #tpu.pipeline_mode<synchronous>, transform_indices = @transform_5, window_bounds = array<i64: 1, 128>}, {pipeline_mode = #tpu.pipeline_mode<synchronous>, transform_indices = @transform_6, window_bounds = array<i64: 128, 128>}, {pipeline_mode = #tpu.pipeline_mode<synchronous>, transform_indices = @transform_7, window_bounds = array<i64: 1, 128>}, {pipeline_mode = #tpu.pipeline_mode<synchronous>, transform_indices = @transform_8, window_bounds = array<i64: 128, 128>}, {pipeline_mode = #tpu.pipeline_mode<synchronous>, transform_indices = @transform_9, window_bounds = array<i64: 1, 128>}, {pipeline_mode = #tpu.pipeline_mode<synchronous>, transform_indices = @transform_10, window_bounds = array<i64: 128, 128>}, {pipeline_mode = #tpu.pipeline_mode<synchronous>, transform_indices = @transform_11, window_bounds = array<i64: 1, 128>}, {transform_indices = @transform_12, window_bounds = array<i64: 8, 128>}, {transform_indices = @transform_13, window_bounds = array<i64: 8, 128>}, {transform_indices = @transform_14, window_bounds = array<i64: 8, 128>}]} {
    %c0 = arith.constant 0 : index
    %c0_0 = arith.constant 0 : index
    %0 = vector.load %arg1[%c0, %c0_0] : memref<8x128xf32, #tpu.memory_space<vmem>>, vector<8x128xf32>
    %1 = arith.truncf %0 : vector<8x128xf32> to vector<8x128xbf16>
    %c0_1 = arith.constant 0 : index
    %c0_2 = arith.constant 0 : index
    %2 = vector.load %arg3[%c0_1, %c0_2] : memref<128x128xbf16, #tpu.memory_space<vmem>>, vector<128x128xbf16>
    %cst = arith.constant dense<0.000000e+00> : vector<8x128xf32>
    %3 = tpu.matmul %1, %2, %cst {dimension_numbers = #tpu.dot_dimension_numbers<[1], [0], [0], [1], [0, 0, 1, 1], [], []>} : vector<8x128xbf16>, vector<128x128xbf16>, vector<8x128xf32> -> vector<8x128xf32>
    %c0_3 = arith.constant 0 : index
    %c0_4 = arith.constant 0 : index
    %4 = vector.load %arg4[%c0_3, %c0_4] : memref<1x128xf32, #tpu.memory_space<vmem>>, vector<1x128xf32>
    %5 = vector.broadcast %4 : vector<1x128xf32> to vector<8x128xf32>
    %6 = arith.addf %3, %5 : vector<8x128xf32>
    %cst_5 = arith.constant 0.000000e+00 : f32
    %7 = vector.broadcast %cst_5 : f32 to vector<8x128xf32>
    %8 = arith.maximumf %6, %7 : vector<8x128xf32>
    %9 = arith.truncf %8 : vector<8x128xf32> to vector<8x128xbf16>
    %c0_6 = arith.constant 0 : index
    %c0_7 = arith.constant 0 : index
    %10 = vector.load %arg5[%c0_6, %c0_7] : memref<128x128xbf16, #tpu.memory_space<vmem>>, vector<128x128xbf16>
    %cst_8 = arith.constant dense<0.000000e+00> : vector<8x128xf32>
    %11 = tpu.matmul %9, %10, %cst_8 {dimension_numbers = #tpu.dot_dimension_numbers<[1], [0], [0], [1], [0, 0, 1, 1], [], []>} : vector<8x128xbf16>, vector<128x128xbf16>, vector<8x128xf32> -> vector<8x128xf32>
    %c0_9 = arith.constant 0 : index
    %c0_10 = arith.constant 0 : index
    %12 = vector.load %arg6[%c0_9, %c0_10] : memref<1x128xf32, #tpu.memory_space<vmem>>, vector<1x128xf32>
    %13 = vector.broadcast %12 : vector<1x128xf32> to vector<8x128xf32>
    %14 = arith.addf %11, %13 : vector<8x128xf32>
    %c0_11 = arith.constant 0 : index
    %c0_12 = arith.constant 0 : index
    %15 = vector.load %arg7[%c0_11, %c0_12] : memref<128x128xbf16, #tpu.memory_space<vmem>>, vector<128x128xbf16>
    %cst_13 = arith.constant dense<0.000000e+00> : vector<8x128xf32>
    %16 = tpu.matmul %9, %15, %cst_13 {dimension_numbers = #tpu.dot_dimension_numbers<[1], [0], [0], [1], [0, 0, 1, 1], [], []>} : vector<8x128xbf16>, vector<128x128xbf16>, vector<8x128xf32> -> vector<8x128xf32>
    %c0_14 = arith.constant 0 : index
    %c0_15 = arith.constant 0 : index
    %17 = vector.load %arg8[%c0_14, %c0_15] : memref<1x128xf32, #tpu.memory_space<vmem>>, vector<1x128xf32>
    %18 = vector.broadcast %17 : vector<1x128xf32> to vector<8x128xf32>
    %19 = arith.addf %16, %18 : vector<8x128xf32>
    %cst_16 = arith.constant 5.000000e-01 : f32
    %20 = vector.broadcast %cst_16 : f32 to vector<8x128xf32>
    %21 = arith.mulf %19, %20 : vector<8x128xf32>
    %22 = math.exp %21 : vector<8x128xf32>
    %c0_17 = arith.constant 0 : index
    %c0_18 = arith.constant 0 : index
    %23 = vector.load %arg2[%c0_17, %c0_18] : memref<8x128xf32, #tpu.memory_space<vmem>>, vector<8x128xf32>
    %24 = arith.mulf %22, %23 : vector<8x128xf32>
    %25 = arith.addf %14, %24 : vector<8x128xf32>
    %26 = arith.truncf %25 : vector<8x128xf32> to vector<8x128xbf16>
    %c0_19 = arith.constant 0 : index
    %c0_20 = arith.constant 0 : index
    %27 = vector.load %arg9[%c0_19, %c0_20] : memref<128x128xbf16, #tpu.memory_space<vmem>>, vector<128x128xbf16>
    %cst_21 = arith.constant dense<0.000000e+00> : vector<8x128xf32>
    %28 = tpu.matmul %26, %27, %cst_21 {dimension_numbers = #tpu.dot_dimension_numbers<[1], [0], [0], [1], [0, 0, 1, 1], [], []>} : vector<8x128xbf16>, vector<128x128xbf16>, vector<8x128xf32> -> vector<8x128xf32>
    %c0_22 = arith.constant 0 : index
    %c0_23 = arith.constant 0 : index
    %29 = vector.load %arg10[%c0_22, %c0_23] : memref<1x128xf32, #tpu.memory_space<vmem>>, vector<1x128xf32>
    %30 = vector.broadcast %29 : vector<1x128xf32> to vector<8x128xf32>
    %31 = arith.addf %28, %30 : vector<8x128xf32>
    %cst_24 = arith.constant 0.000000e+00 : f32
    %32 = vector.broadcast %cst_24 : f32 to vector<8x128xf32>
    %33 = arith.maximumf %31, %32 : vector<8x128xf32>
    %34 = arith.truncf %33 : vector<8x128xf32> to vector<8x128xbf16>
    %c0_25 = arith.constant 0 : index
    %c0_26 = arith.constant 0 : index
    %35 = vector.load %arg11[%c0_25, %c0_26] : memref<128x128xbf16, #tpu.memory_space<vmem>>, vector<128x128xbf16>
    %cst_27 = arith.constant dense<0.000000e+00> : vector<8x128xf32>
    %36 = tpu.matmul %34, %35, %cst_27 {dimension_numbers = #tpu.dot_dimension_numbers<[1], [0], [0], [1], [0, 0, 1, 1], [], []>} : vector<8x128xbf16>, vector<128x128xbf16>, vector<8x128xf32> -> vector<8x128xf32>
    %c0_28 = arith.constant 0 : index
    %c0_29 = arith.constant 0 : index
    %37 = vector.load %arg12[%c0_28, %c0_29] : memref<1x128xf32, #tpu.memory_space<vmem>>, vector<1x128xf32>
    %38 = vector.broadcast %37 : vector<1x128xf32> to vector<8x128xf32>
    %39 = arith.addf %36, %38 : vector<8x128xf32>
    %40 = arith.negf %39 : vector<8x128xf32>
    %41 = math.exp %40 : vector<8x128xf32>
    %cst_30 = arith.constant 1.000000e+00 : f32
    %42 = vector.broadcast %cst_30 : f32 to vector<8x128xf32>
    %43 = arith.addf %42, %41 : vector<8x128xf32>
    %44 = arith.divf %42, %43 : vector<8x128xf32>
    %c0_31 = arith.constant 0 : index
    %c0_32 = arith.constant 0 : index
    %45 = vector.load %arg13[%c0_31, %c0_32] : memref<8x128xf32, #tpu.memory_space<vmem>>, vector<8x128xf32>
    tpu.vector_store %arg13[%c0_31, %c0_32], %44 {strides = array<i32>} : memref<8x128xf32, #tpu.memory_space<vmem>>, vector<8x128xf32>,
    %c0_33 = arith.constant 0 : index
    %c0_34 = arith.constant 0 : index
    %46 = vector.load %arg14[%c0_33, %c0_34] : memref<8x128xf32, #tpu.memory_space<vmem>>, vector<8x128xf32>
    tpu.vector_store %arg14[%c0_33, %c0_34], %14 {strides = array<i32>} : memref<8x128xf32, #tpu.memory_space<vmem>>, vector<8x128xf32>,
    %c0_35 = arith.constant 0 : index
    %c0_36 = arith.constant 0 : index
    %47 = vector.load %arg15[%c0_35, %c0_36] : memref<8x128xf32, #tpu.memory_space<vmem>>, vector<8x128xf32>
    tpu.vector_store %arg15[%c0_35, %c0_36], %19 {strides = array<i32>} : memref<8x128xf32, #tpu.memory_space<vmem>>, vector<8x128xf32>,
    return
  }
  func.func @transform_0(%arg0: i32) -> (i32, i32) {
    %c0_i32 = arith.constant 0 : i32
    %c0_i32_0 = arith.constant 0 : i32
    return %arg0, %c0_i32 : i32, i32
  }
  func.func @transform_1(%arg0: i32) -> (i32, i32) {
    %c0_i32 = arith.constant 0 : i32
    %c0_i32_0 = arith.constant 0 : i32
    return %arg0, %c0_i32 : i32, i32
  }
  func.func @transform_2(%arg0: i32) -> (i32, i32) {
    %c0_i32 = arith.constant 0 : i32
    %c0_i32_0 = arith.constant 0 : i32
    %c0_i32_1 = arith.constant 0 : i32
    return %c0_i32, %c0_i32_0 : i32, i32
  }
  func.func @transform_3(%arg0: i32) -> (i32, i32) {
    %c0_i32 = arith.constant 0 : i32
    %c0_i32_0 = arith.constant 0 : i32
    %c0_i32_1 = arith.constant 0 : i32
    return %c0_i32, %c0_i32_0 : i32, i32
  }
  func.func @transform_4(%arg0: i32) -> (i32, i32) {
    %c0_i32 = arith.constant 0 : i32
    %c0_i32_0 = arith.constant 0 : i32
    %c0_i32_1 = arith.constant 0 : i32
    return %c0_i32, %c0_i32_0 : i32, i32
  }
  func.func @transform_5(%arg0: i32) -> (i32, i32) {
    %c0_i32 = arith.constant 0 : i32
    %c0_i32_0 = arith.constant 0 : i32
    %c0_i32_1 = arith.constant 0 : i32
    return %c0_i32, %c0_i32_0 : i32, i32
  }
  func.func @transform_6(%arg0: i32) -> (i32, i32) {
    %c0_i32 = arith.constant 0 : i32
    %c0_i32_0 = arith.constant 0 : i32
    %c0_i32_1 = arith.constant 0 : i32
    return %c0_i32, %c0_i32_0 : i32, i32
  }
  func.func @transform_7(%arg0: i32) -> (i32, i32) {
    %c0_i32 = arith.constant 0 : i32
    %c0_i32_0 = arith.constant 0 : i32
    %c0_i32_1 = arith.constant 0 : i32
    return %c0_i32, %c0_i32_0 : i32, i32
  }
  func.func @transform_8(%arg0: i32) -> (i32, i32) {
    %c0_i32 = arith.constant 0 : i32
    %c0_i32_0 = arith.constant 0 : i32
    %c0_i32_1 = arith.constant 0 : i32
    return %c0_i32, %c0_i32_0 : i32, i32
  }
  func.func @transform_9(%arg0: i32) -> (i32, i32) {
    %c0_i32 = arith.constant 0 : i32
    %c0_i32_0 = arith.constant 0 : i32
    %c0_i32_1 = arith.constant 0 : i32
    return %c0_i32, %c0_i32_0 : i32, i32
  }
  func.func @transform_10(%arg0: i32) -> (i32, i32) {
    %c0_i32 = arith.constant 0 : i32
    %c0_i32_0 = arith.constant 0 : i32
    %c0_i32_1 = arith.constant 0 : i32
    return %c0_i32, %c0_i32_0 : i32, i32
  }
  func.func @transform_11(%arg0: i32) -> (i32, i32) {
    %c0_i32 = arith.constant 0 : i32
    %c0_i32_0 = arith.constant 0 : i32
    %c0_i32_1 = arith.constant 0 : i32
    return %c0_i32, %c0_i32_0 : i32, i32
  }
  func.func @transform_12(%arg0: i32) -> (i32, i32) {
    %c0_i32 = arith.constant 0 : i32
    %c0_i32_0 = arith.constant 0 : i32
    return %arg0, %c0_i32 : i32, i32
  }
  func.func @transform_13(%arg0: i32) -> (i32, i32) {
    %c0_i32 = arith.constant 0 : i32
    %c0_i32_0 = arith.constant 0 : i32
    return %arg0, %c0_i32 : i32, i32
  }
  func.func @transform_14(%arg0: i32) -> (i32, i32) {
    %c0_i32 = arith.constant 0 : i32
    %c0_i32_0 = arith.constant 0 : i32
    return %arg0, %c0_i32 : i32, i32
  }
}

</mosaic_0001>

<bundles_post_ra>
// kernel: fc_vae_forward.1
= control target key start
LH: loop header
LB: loop body
LE: loop exit
PB: predicated region body
PF: predicated region fallthrough
CT: control target
= control target key end

     0   :  { %20 = vsyncpa [#allocation3], 0  ;;  %v977_v1 = vmov 0.0   ;;  %vm978_vm0 = vmmov 0   ;;  %s1284_s0 = inlined_call_operand.vmem [shape: f32[8,128], index: 0, kind: input, shape index: {}]   ;;  %s1285_s1 = inlined_call_operand.vmem [shape: f32[8,128], index: 1, kind: input, shape index: {}]   ;;  %s1286_s2 = inlined_call_operand.vmem [shape: bf16[128,128], index: 2, kind: input, shape index: {}]   ;;  %s1287_s3 = inlined_call_operand.vmem [shape: f32[1,128], index: 3, kind: input, shape index: {}]   ;;  %s1288_s4 = inlined_call_operand.vmem [shape: bf16[128,128], index: 4, kind: input, shape index: {}]   ;;  %s1289_s5 = inlined_call_operand.vmem [shape: f32[1,128], index: 5, kind: input, shape index: {}]   ;;  %s1290_s6 = inlined_call_operand.vmem [shape: bf16[128,128], index: 6, kind: input, shape index: {}]   ;;  %s1291_s7 = inlined_call_operand.vmem [shape: f32[1,128], index: 7, kind: input, shape index: {}]   ;;  %s1292_s8 = inlined_call_operand.vmem [shape: bf16[128,128], index: 8, kind: input, shape index: {}]   ;;  %s1293_s9 = inlined_call_operand.vmem [shape: f32[1,128], index: 9, kind: input, shape index: {}]   ;;  %s1294_s10 = inlined_call_operand.vmem [shape: bf16[128,128], index: 10, kind: input, shape index: {}]   ;;  %s1295_s11 = inlined_call_operand.vmem [shape: f32[1,128], index: 11, kind: input, shape index: {}]   ;;  %s1296_s12 = inlined_call_operand.hbm [shape: f32[8,128], index: 12, kind: output, shape index: {0}]   ;;  %s1297_s13 = inlined_call_operand.hbm [shape: f32[8,128], index: 13, kind: output, shape index: {1}]   ;;  %s1298_s14 = inlined_call_operand.hbm [shape: f32[8,128], index: 14, kind: output, shape index: {2}]  }
   0x1   :  { %v861_v0 = vld [vmem:[%s1286_s2] sm:$0xff]   ;;  %756 = vmatprep.subr.bf16.mxu0 %v977_v1  ;;  %776 = vmatprep.subr.bf16.mxu1 %v977_v1  ;;  %v862_v2 = vld [vmem:[%s1286_s2 + $0x8] sm:$0xff]   ;;  %v863_v3 = vld [vmem:[%s1286_s2 + $0x10] sm:$0xff]  }
   0x2   :  { %757 = vmatpush3.bf16.msra.mxu0 %v861_v0  ;;  %772 = vmatprep.mubr.msk.bf16.mxu0 %vm978_vm0, %v977_v1  ;;  %v869_v4 = vld [vmem:[%s1288_s4] sm:$0xff]   ;;  %v864_v5 = vld [vmem:[%s1286_s2 + $0x18] sm:$0xff]   ;;  %v871_v6 = vld [vmem:[%s1288_s4 + $0x8] sm:$0xff]  }
   0x3   :  { %758 = vmatprep.subr.bf16.mxu0 %v977_v1  ;;  %792 = vmatprep.mubr.msk.bf16.mxu1 %vm978_vm0, %v977_v1  ;;  %v865_v7 = vld [vmem:[%s1286_s2 + $0x20] sm:$0xff]   ;;  %v873_v8 = vld [vmem:[%s1288_s4 + $0x10] sm:$0xff]   ;;  %v866_v9 = vld [vmem:[%s1286_s2 + $0x28] sm:$0xff]  }
   0x4   :  { %777 = vmatpush3.bf16.msra.mxu1 %v869_v4  ;;  %v875_v10 = vld [vmem:[%s1288_s4 + $0x18] sm:$0xff]   ;;  %v867_v11 = vld [vmem:[%s1286_s2 + $0x30] sm:$0xff]   ;;  %v877_v12 = vld [vmem:[%s1288_s4 + $0x20] sm:$0xff]  }
   0x5   :  { %778 = vmatprep.subr.bf16.mxu1 %v977_v1  ;;  %v868_v13 = vld [vmem:[%s1286_s2 + $0x38] sm:$0xff]   ;;  %v47_v14 = vld [vmem:[%s1284_s0] sm:$0xff]  ;;  %v879_v15 = vld [vmem:[%s1288_s4 + $0x28] sm:$0xff]  }
   0x6   :  { %759 = vmatpush3.bf16.msra.mxu0 %v862_v2  ;;  %v870_v16 = vld [vmem:[%s1290_s6] sm:$0xff]   ;;  %v48_v17 = vpack.c.bf16 %v47_v14, %v47_v14  ;;  %v872_v18 = vld [vmem:[%s1290_s6 + $0x8] sm:$0xff]  }
   0x7   :  { %760 = vmatprep.subr.bf16.mxu0 %v977_v1 }
   0x8   :  { %779 = vmatpush3.bf16.msra.mxu1 %v871_v6 }
   0x9   :  { %780 = vmatprep.subr.bf16.mxu1 %v977_v1 }
   0xa   :  { %761 = vmatpush3.bf16.msra.mxu0 %v863_v3 }
   0xb   :  { %762 = vmatprep.subr.bf16.mxu0 %v977_v1 }
   0xc   :  { %781 = vmatpush3.bf16.msra.mxu1 %v873_v8 }
   0xd   :  { %782 = vmatprep.subr.bf16.mxu1 %v977_v1 }
   0xe   :  { %763 = vmatpush3.bf16.msra.mxu0 %v864_v5 }
   0xf   :  { %764 = vmatprep.subr.bf16.mxu0 %v977_v1 }
  0x10   :  { %783 = vmatpush3.bf16.msra.mxu1 %v875_v10 }
  0x11   :  { %784 = vmatprep.subr.bf16.mxu1 %v977_v1 }
  0x12   :  { %765 = vmatpush3.bf16.msra.mxu0 %v865_v7 }
  0x13   :  { %766 = vmatprep.subr.bf16.mxu0 %v977_v1 }
  0x14   :  { %785 = vmatpush3.bf16.msra.mxu1 %v877_v12 }
  0x15   :  { %786 = vmatprep.subr.bf16.mxu1 %v977_v1 }
  0x16   :  { %767 = vmatpush3.bf16.msra.mxu0 %v866_v9 }
  0x17   :  { %768 = vmatprep.subr.bf16.mxu0 %v977_v1 }
  0x18   :  { %787 = vmatpush3.bf16.msra.mxu1 %v879_v15 }
  0x19   :  { %788 = vmatprep.subr.bf16.mxu1 %v977_v1 }
  0x1a   :  { %769 = vmatpush3.bf16.msra.mxu0 %v867_v11 }
  0x1b   :  { %770 = vmatprep.subr.bf16.mxu0 %v977_v1 }
  0x1e   :  { %771 = vmatpush3.bf16.msra.mxu0 %v868_v13 }
  0x1f   :  { %796 = vmatprep.subr.bf16.mxu0 %v977_v1 }
  0x21   :  { %773 = vmatmul.mubr.bf16.vlgmr.msra.gmra.mrb[0].mxu0 %v48_v17 }
  0x22   :  { %797 = vmatpush3.bf16.msra.mxu0 %v870_v16  ;;  %812 = vmatprep.mubr.msk.bf16.mxu0 %vm978_vm0, %v977_v1 }
  0x23   :  { %21 = vsyncpa [#allocation5], 0  ;;  %798 = vmatprep.subr.bf16.mxu0 %v977_v1  ;;  %v874_v19 = vld [vmem:[%s1290_s6 + $0x10] sm:$0xff]   ;;  %v876_v20 = vld [vmem:[%s1290_s6 + $0x18] sm:$0xff]  }
  0x24   :  { %v878_v21 = vld [vmem:[%s1290_s6 + $0x20] sm:$0xff]   ;;  %v880_v22 = vld [vmem:[%s1290_s6 + $0x28] sm:$0xff]   ;;  %v881_v23 = vld [vmem:[%s1288_s4 + $0x30] sm:$0xff]  }
  0x25   :  { %v882_v24 = vld [vmem:[%s1290_s6 + $0x30] sm:$0xff]   ;;  %789 = vmatpush3.bf16.msra.mxu1 %v881_v23  ;;  %v883_v25 = vld [vmem:[%s1288_s4 + $0x38] sm:$0xff]   ;;  %v665_v27 = vld [vmem:[%s1287_s3] ss:$0 sm:$0xff] }
  0x26   :  { %799 = vmatpush3.bf16.msra.mxu0 %v872_v18  ;;  %790 = vmatprep.subr.bf16.mxu1 %v977_v1  ;;  %v884_v26 = vld [vmem:[%s1290_s6 + $0x38] sm:$0xff]   ;;  %v885_v34 = vld [vmem:[%s1292_s8] sm:$0xff]   ;;  %v886_v36 = vld [vmem:[%s1292_s8 + $0x8] sm:$0xff]  }
  0x27   :  { %800 = vmatprep.subr.bf16.mxu0 %v977_v1  ;;  %v887_v37 = vld [vmem:[%s1292_s8 + $0x10] sm:$0xff]   ;;  %v888_v38 = vld [vmem:[%s1292_s8 + $0x18] sm:$0xff]   ;;  %v889_v39 = vld [vmem:[%s1292_s8 + $0x20] sm:$0xff]  }
  0x28   :  { %v890_v40 = vld [vmem:[%s1292_s8 + $0x28] sm:$0xff]   ;;  %v891_v41 = vld [vmem:[%s1292_s8 + $0x30] sm:$0xff]   ;;  %v892_v42 = vld [vmem:[%s1292_s8 + $0x38] sm:$0xff]  }
  0x29   :  { %791 = vmatpush3.bf16.msra.mxu1 %v883_v25  ;;  %v893_v43 = vld [vmem:[%s1294_s10] sm:$0xff]   ;;  %v894_v44 = vld [vmem:[%s1294_s10 + $0x8] sm:$0xff]   ;;  %v895_v45 = vld [vmem:[%s1294_s10 + $0x10] sm:$0xff]  }
  0x2a   :  { %801 = vmatpush3.bf16.msra.mxu0 %v874_v19  ;;  %816 = vmatprep.subr.bf16.mxu1 %v977_v1  ;;  %v896_v46 = vld [vmem:[%s1294_s10 + $0x18] sm:$0xff]   ;;  %v897_v47 = vld [vmem:[%s1294_s10 + $0x20] sm:$0xff]   ;;  %v898_v48 = vld [vmem:[%s1294_s10 + $0x28] sm:$0xff]  }
  0x2b   :  { %802 = vmatprep.subr.bf16.mxu0 %v977_v1  ;;  %v674_v49 = vld [vmem:[%s1289_s5] ss:$0 sm:$0xff]  ;;  %v899_v5 = vld [vmem:[%s1294_s10 + $0x30] sm:$0xff]   ;;  %v900_v6 = vld [vmem:[%s1294_s10 + $0x38] sm:$0xff]  }
  0x2c   :  { %v683_v50 = vld [vmem:[%s1291_s7] ss:$0 sm:$0xff] }
  0x2d   :  { %v387_v63 = vld [vmem:[%s1285_s1] sm:$0xff]  ;;  %s979_s1 = smov [#allocation4]  }
  0x2e   :  { %803 = vmatpush3.bf16.msra.mxu0 %v876_v20  ;;  %v692_v7 = vld [vmem:[%s1293_s9] ss:$0 sm:$0xff]  ;;  %s640_s26 = sshll.u32 %s979_s1, 4  ;;  %s641_s26 = int_to_ptr.vmem [resolvable:$true] %s640_s26 }
  0x2f   :  { %804 = vmatprep.subr.bf16.mxu0 %v977_v1  ;;  %s907_s27 = scalar_lea.vmem %s641_s26, 128  ;;  %p912_p1 = scmp.lt.s32.totalorder %s641_s26, %s641_s26 }
  0x30   :  { %p908_p0 = scmp.ne.s32.totalorder %s641_s26, %s907_s27  ;;  %p913_p2 = scmp.lt.s32.totalorder %s907_s27, %s907_s27 }
  0x32   :  { %805 = vmatpush3.bf16.msra.mxu0 %v878_v21  ;;  %p914_p3 = por %p913_p2, %p912_p1 }
  0x33   :  { %806 = vmatprep.subr.bf16.mxu0 %v977_v1 }
  0x34   :  { %p915_p4 = pnand %p914_p3, %p908_p0 }
  0x36   :  { %807 = vmatpush3.bf16.msra.mxu0 %v880_v22 }
  0x37   :  { %808 = vmatprep.subr.bf16.mxu0 %v977_v1 }
  0x3a   :  { %809 = vmatpush3.bf16.msra.mxu0 %v882_v24 }
  0x3b   :  { %810 = vmatprep.subr.bf16.mxu0 %v977_v1 }
  0x3e   :  { %811 = vmatpush3.bf16.msra.mxu0 %v884_v26 }
  0x3f   :  { %836 = vmatprep.subr.bf16.mxu0 %v977_v1 }
  0xf4   :  { %v154_v28 = vpop.f32.mrb[0].mxu0 }
  0xf5   :  { %v155_v29 = vadd.f32 %v665_v27, %v154_v28  ;;  %v774_v30 = vpop.f32.mrb[1].mxu0 }
  0xf6   :  { %v157_v31 = vpop.f32.mrb[2].mxu0 }
  0xf7   :  { %v160_v32 = vmax.f32 %v155_v29, 0.0  ;;  %v775_v33 = vpop.f32.mrb[3].mxu0 }
  0xf9   :  { %v161_v35 = vpack.c.bf16 %v160_v32, %v160_v32 }
  0xfb   :  { %793 = vmatmul.mubr.bf16.vlgmr.msra.gmra.mrb[0].mxu1 %v161_v35  ;;  %813 = vmatmul.mubr.bf16.vlgmr.msra.gmra.mrb[4].mxu0 %v161_v35 }
  0xfc   :  { %817 = vmatpush3.bf16.msra.mxu1 %v885_v34  ;;  %832 = vmatprep.mubr.msk.bf16.mxu1 %vm978_vm0, %v977_v1 }
  0xfd   :  { %818 = vmatprep.subr.bf16.mxu1 %v977_v1  ;;  %852 = vmatprep.mubr.msk.bf16.mxu0 %vm978_vm0, %v977_v1 }
  0xfe   :  { %837 = vmatpush3.bf16.msra.mxu0 %v893_v43 }
  0xff   :  { %838 = vmatprep.subr.bf16.mxu0 %v977_v1 }
 0x100   :  { %819 = vmatpush3.bf16.msra.mxu1 %v886_v36 }
 0x101   :  { %820 = vmatprep.subr.bf16.mxu1 %v977_v1 }
 0x102   :  { %839 = vmatpush3.bf16.msra.mxu0 %v894_v44 }
 0x103   :  { %840 = vmatprep.subr.bf16.mxu0 %v977_v1 }
 0x104   :  { %821 = vmatpush3.bf16.msra.mxu1 %v887_v37 }
 0x105   :  { %822 = vmatprep.subr.bf16.mxu1 %v977_v1 }
 0x106   :  { %841 = vmatpush3.bf16.msra.mxu0 %v895_v45 }
 0x107   :  { %842 = vmatprep.subr.bf16.mxu0 %v977_v1 }
 0x108   :  { %823 = vmatpush3.bf16.msra.mxu1 %v888_v38 }
 0x109   :  { %824 = vmatprep.subr.bf16.mxu1 %v977_v1 }
 0x10a   :  { %843 = vmatpush3.bf16.msra.mxu0 %v896_v46 }
 0x10b   :  { %844 = vmatprep.subr.bf16.mxu0 %v977_v1 }
 0x10c   :  { %825 = vmatpush3.bf16.msra.mxu1 %v889_v39 }
 0x10d   :  { %826 = vmatprep.subr.bf16.mxu1 %v977_v1 }
 0x10e   :  { %845 = vmatpush3.bf16.msra.mxu0 %v897_v47 }
 0x10f   :  { %846 = vmatprep.subr.bf16.mxu0 %v977_v1 }
 0x110   :  { %827 = vmatpush3.bf16.msra.mxu1 %v890_v40 }
 0x111   :  { %828 = vmatprep.subr.bf16.mxu1 %v977_v1 }
 0x112   :  { %847 = vmatpush3.bf16.msra.mxu0 %v898_v48 }
 0x113   :  { %848 = vmatprep.subr.bf16.mxu0 %v977_v1 }
 0x114   :  { %829 = vmatpush3.bf16.msra.mxu1 %v891_v41 }
 0x115   :  { %830 = vmatprep.subr.bf16.mxu1 %v977_v1 }
 0x116   :  { %849 = vmatpush3.bf16.msra.mxu0 %v899_v5 }
 0x117   :  { %850 = vmatprep.subr.bf16.mxu0 %v977_v1 }
 0x118   :  { %831 = vmatpush3.bf16.msra.mxu1 %v892_v42 }
 0x11a   :  { %851 = vmatpush3.bf16.msra.mxu0 %v900_v6 }
 0x1ce   :  { %v267_v51 = vpop.f32.mrb[0].mxu1  ;;  %v378_v52 = vpop.f32.mrb[4].mxu0 }
 0x1cf   :  { %v268_v53 = vadd.f32 %v674_v49, %v267_v51  ;;  %v379_v54 = vadd.f32 %v683_v50, %v378_v52  ;;  %v794_v55 = vpop.f32.mrb[1].mxu1  ;;  %v814_v56 = vpop.f32.mrb[5].mxu0 }
 0x1d0   :  { %v270_v57 = vpop.f32.mrb[2].mxu1  ;;  %v381_v58 = vpop.f32.mrb[6].mxu0 }
 0x1d1   :  { %622 = vst [vmem:[#allocation4] sm:$0xff] %v268_v53  ;;  %v384_v59 = vmul.f32 0.5, %v379_v54  ;;  %623 = vst [vmem:[#allocation6] sm:$0xff] %v379_v54  ;;  %v795_v60 = vpop.f32.mrb[3].mxu1  ;;  %v815_v61 = vpop.f32.mrb[7].mxu0 }
 0x1d3   :  { %v385_v62 = vmul.f32 1.442695, %v384_v59 }
 0x1d5   :  { %901 = vpow2.f32 %v385_v62 }
 0x1df   :  { %v902_v0 = vpop.eup %901 }
 0x1e0   :  { %v388_v2 = vmul.f32 %v902_v0, %v387_v63 }
 0x1e2   :  { %v389_v3 = vadd.f32 %v388_v2, %v268_v53 }
 0x1e4   :  { %v390_v4 = vpack.c.bf16 %v389_v3, %v389_v3 }
 0x1e6   :  { %833 = vmatmul.mubr.bf16.vlgmr.msra.gmra.mrb[4].mxu1 %v390_v4 }
 0x2b9   :  { %v496_v8 = vpop.f32.mrb[4].mxu1 }
 0x2ba   :  { %v497_v9 = vadd.f32 %v692_v7, %v496_v8  ;;  %v834_v10 = vpop.f32.mrb[5].mxu1 }
 0x2bb   :  { %v499_v11 = vpop.f32.mrb[6].mxu1 }
 0x2bc   :  { %v502_v12 = vmax.f32 %v497_v9, 0.0  ;;  %v835_v13 = vpop.f32.mrb[7].mxu1 }
 0x2be   :  { %v503_v14 = vpack.c.bf16 %v502_v12, %v502_v12 }
 0x2c0   :  { %853 = vmatmul.mubr.bf16.vlgmr.msra.gmra.mrb[8].mxu0 %v503_v14 }
 0x2c1   :  { %918 = shalt.err (!%p915_p4)
}
 0x2c2   :  { %s919_s28 = scalar_lea.hbm %s1297_s13, 128 }
 0x2c3   :  { %p920_p5 = scmp.ne.s32.totalorder %s1297_s13, %s919_s28  ;;  %p923_p6 = scmp.lt.u32.totalorder %s919_s28, %s1297_s13 }
 0x2c5   :  { %p925_p7 = pnand %p923_p6, %p920_p5 }
 0x2c7   :  { %928 = shalt.err (!%p925_p7)
}
 0x2c8   :  { %643 = dma.vmem_to_hbm [thread:$0]  %s641_s26, 128, %s1297_s13, [#allocation5]  }
 0x2c9   :  { %s980_s30 = smov [#allocation6]  }
 0x2ca   :  { %s650_s3 = sshll.u32 %s980_s30, 4  ;;  %s651_s3 = int_to_ptr.vmem [resolvable:$true] %s650_s3 }
 0x2cb   :  { %s929_s15 = scalar_lea.vmem %s651_s3, 128  ;;  %p934_p9 = scmp.lt.s32.totalorder %s651_s3, %s651_s3 }
 0x2cc   :  { %p930_p8 = scmp.ne.s32.totalorder %s651_s3, %s929_s15  ;;  %p935_p10 = scmp.lt.s32.totalorder %s929_s15, %s929_s15 }
 0x2ce   :  { %p936_p11 = por %p935_p10, %p934_p9 }
 0x2d0   :  { %p937_p12 = pnand %p936_p11, %p930_p8 }
 0x2d2   :  { %940 = shalt.err (!%p937_p12)
}
 0x2d3   :  { %s941_s18 = scalar_lea.hbm %s1298_s14, 128 }
 0x2d4   :  { %p942_p13 = scmp.ne.s32.totalorder %s1298_s14, %s941_s18  ;;  %p945_p0 = scmp.lt.u32.totalorder %s941_s18, %s1298_s14 }
 0x2d6   :  { %p947_p1 = pnand %p945_p0, %p942_p13 }
 0x2d8   :  { %950 = shalt.err (!%p947_p1)
}
 0x2d9   :  { %653 = dma.vmem_to_hbm [thread:$0]  %s651_s3, 128, %s1298_s14, [#allocation5]   ;;  %v701_v1 = vld [vmem:[%s1295_s11] ss:$0 sm:$0xff] }
 0x2da   :  { %s981_s24 = smov [#allocation2]  }
 0x2db   :  { %s630_s25 = sshll.u32 %s981_s24, 4  ;;  %s631_s25 = int_to_ptr.vmem [resolvable:$true] %s630_s25 }
 0x2dc   :  { %s951_s14 = scalar_lea.vmem %s631_s25, 128  ;;  %p956_p3 = scmp.lt.s32.totalorder %s631_s25, %s631_s25 }
 0x2dd   :  { %p952_p2 = scmp.ne.s32.totalorder %s631_s25, %s951_s14  ;;  %p957_p4 = scmp.lt.s32.totalorder %s951_s14, %s951_s14 }
 0x2df   :  { %p958_p5 = por %p957_p4, %p956_p3 }
 0x2e1   :  { %p959_p6 = pnand %p958_p5, %p952_p2 }
 0x393   :  { %v609_v15 = vpop.f32.mrb[8].mxu0 }
 0x394   :  { %v610_v16 = vadd.f32 %v701_v1, %v609_v15  ;;  %v854_v17 = vpop.f32.mrb[9].mxu0 }
 0x395   :  { %v612_v18 = vpop.f32.mrb[10].mxu0 }
 0x396   :  { %v710_v19 = vmul.f32 -1.442695, %v610_v16  ;;  %v855_v20 = vpop.f32.mrb[11].mxu0 }
 0x398   :  { %903 = vpow2.f32 %v710_v19 }
 0x3a2   :  { %v904_v21 = vpop.eup %903 }
 0x3a3   :  { %v618_v22 = vadd.f32 1.0, %v904_v21 }
 0x3a5   :  { %905 = vrcp.f32 %v618_v22 }
 0x3af   :  { %v906_v23 = vpop.eup %905 }
 0x3b0   :  { %621 = vst [vmem:[#allocation2] sm:$0xff] %v906_v23 }
 0x3b1   :  { %962 = shalt.err (!%p959_p6)
}
 0x3b2   :  { %s963_s26 = scalar_lea.hbm %s1296_s12, 128 }
 0x3b3   :  { %p964_p7 = scmp.ne.s32.totalorder %s1296_s12, %s963_s26  ;;  %p967_p8 = scmp.lt.u32.totalorder %s963_s26, %s1296_s12 }
 0x3b5   :  { %p969_p9 = pnand %p967_p8, %p964_p7 }
 0x3b7   :  { %972 = shalt.err (!%p969_p9)
}
 0x3b8   :  { %633 = dma.vmem_to_hbm [thread:$0]  %s631_s25, 128, %s1296_s12, [#allocation3]  }
 0x3b9   :  { %973 = dma.done.wait [#allocation3], 128  }
 0x3ba   :  { %974 = vsyncadd [#allocation3], 4294967168 }
 0x3bb   :  { %975 = dma.done.wait [#allocation5], 256  }
 0x3bc   :  { %976 = vsyncadd [#allocation5], 4294967040 }
 0x3bd   :  { %663 = vsyncpa [#allocation3], 1 }
 0x3be   :  { %664 = vsyncpa [#allocation5], 1 }

</bundles_post_ra>
